<compile_context>
chip_gen: v6e
topology: v6e:2x2x1
jax: 0.10.0
libtpu: 0.0.40
codegen_flags: <defaults>
</compile_context>

<pallas_src>
import jax
import jax.numpy as jnp
from jax import lax
from jax.experimental import pallas as pl
from jax.experimental.pallas import tpu as pltpu


def _make_attention_kernel(tb, C):
    """Builds the kernel for a batch tile of `tb` samples, `C` channels each."""
    R = tb * C  # rows per x block

    def kernel(scale_ref, x_ref, w1_ref, b1_ref, w2_ref, b2_ref,
               out_ref, acc_ref):
        # scale_ref: SMEM (2,) = [1/(H*W), 1/temperature]   (scalar prefetch)
        # x_ref:     (R, thw) VMEM block of the current batch-tile / HW-chunk
        # w1_ref:    (R, hidden) = W1 tiled per local batch row
        # acc_ref:   (R, 1) f32 running spatial sum (persists across HW steps)
        hw_step = pl.program_id(1)

        @pl.when(hw_step == 0)
        def _init():
            acc_ref[...] = jnp.zeros_like(acc_ref)

        # Streamed partial spatial sum.  The per-8-row lane reduce is a handful
        # of XLU ops per step and is fully hidden under the HBM DMA of the tile.
        acc_ref[...] += jnp.sum(x_ref[...].astype(jnp.float32),
                                axis=-1, keepdims=True)

        @pl.when(hw_step == pl.num_programs(1) - 1)
        def _finalize():
            inv_hw = scale_ref[0]
            inv_temp = scale_ref[1]

            pooled_col = acc_ref[...] * inv_hw            # (R, 1)
            prod = pooled_col * w1_ref[...]               # (R, hidden) broadcast
            b1_row = b1_ref[...]                          # (1, hidden)
            w2 = w2_ref[...]                              # (hidden, K)
            b2_row = b2_ref[...]                          # (1, K)

            if tb > 1:
                row_id = lax.broadcasted_iota(jnp.int32, (R, 1), 0)

            rows = []
            for b in range(tb):                           # static, tiny epilogue
                if tb > 1:
                    sel = (row_id >= b * C) & (row_id < (b + 1) * C)
                    prod_b = jnp.where(sel, prod, 0.0)
                else:
                    prod_b = prod
                # pooled(1,C) @ W1 as broadcast-multiply + sublane reduce.
                h = jnp.sum(prod_b, axis=0, keepdims=True) + b1_row   # (1, hidden)
                h = jnp.maximum(h, 0.0)
                # h @ W2: broadcast over sublanes of W2, reduce hidden.
                s = jnp.sum(h[:, :, None] * w2, axis=1) + b2_row      # (1, K)
                s = s * inv_temp
                # Numerically stable, exact softmax.
                m = jnp.max(s, axis=-1, keepdims=True)
                e = jnp.exp(s - m)
                rows.append(e / jnp.sum(e, axis=-1, keepdims=True))

            block = rows[0] if tb == 1 else jnp.concatenate(rows, axis=0)  # (tb, K)
            out_ref[...] = block[None, :, :].astype(out_ref.dtype)

    return kernel


def _choose_tiles(B, C, HW, itemsize, block_b=None, block_hw=None):
    # Batch tile: smallest divisor of B with sublane-aligned rows (tb*C % 8 == 0)
    # -> dense packing AND the largest possible number of parallel batch tiles
    # (megacore lever on v7x).  Fall back to the full batch (full-dim block is
    # always a legal BlockSpec).
    if block_b is not None:
        tb = block_b
    else:
        tb = None
        for d in range(1, B + 1):
            if B % d == 0 and (d * C) % 8 == 0:
                tb = d
                break
        if tb is None:
            tb = B
    rows = tb * C

    if block_hw is not None:
        thw = block_hw
    else:
        try:
            cap = pltpu.get_tpu_info().vmem_capacity_bytes
        except Exception:
            cap = 64 * 1024 * 1024          # conservative (v7x per-TC)
        # One x tile <= 1/8 of physical VMEM, capped at 8 MiB: big enough to
        # amortize the ~0.35 us/step pipeline overhead (<~5% of the DMA time),
        # small enough that the double-buffered pair + weights fit everywhere
        # and the fully-unrolled per-step reduce stays a manageable size.
        tile_budget = max(2 * 1024 * 1024, min(cap // 8, 8 * 1024 * 1024))
        max_thw = max(1, tile_budget // (rows * itemsize))
        thw = max(128, (max_thw // 128) * 128)
        thw = min(thw, pl.cdiv(HW, 128) * 128)   # never bigger than needed
    return tb, thw


def attention_layer(x, w1, b1, w2, b2, temperature=1.0, *,
                    block_b=None, block_hw=None):
    """x: (B, C, H, W) f32/bf16. w1: (C, hidden), b1: (hidden,),
       w2: (hidden, K), b2: (K,). Returns (B, K) softmax scores (f32)."""
    B, C, H, W = x.shape
    hidden = w1.shape[1]
    K = w2.shape[1]
    HW = H * W
    itemsize = jnp.dtype(x.dtype).itemsize

    tb, thw = _choose_tiles(B, C, HW, itemsize, block_b, block_hw)
    assert B % tb == 0, "batch tile must divide B"
    assert thw % 128 == 0, "HW chunk must be lane-aligned (multiple of 128)"
    R = tb * C
    assert (R % 8 == 0) or (tb == B), \
        "row block must be sublane-aligned or cover the whole batch"

    hw_pad = pl.cdiv(HW, thw) * thw
    x2 = x.reshape(B * C, HW)
    if hw_pad != HW:
        # Zero padding does not change the spatial SUM; we scale by 1/(H*W).
        x2 = jnp.pad(x2, ((0, 0), (0, hw_pad - HW)))

    # W1 tiled per local batch row so the epilogue needs no reshape/transpose.
    w1_rows = jnp.tile(w1, (tb, 1)) if tb > 1 else w1        # (R, hidden)
    b1_row = b1.reshape(1, hidden)
    b2_row = b2.reshape(1, K)
    scales = jnp.asarray([1.0 / float(HW), 1.0 / float(temperature)],
                         dtype=jnp.float32)

    grid = (B // tb, hw_pad // thw)

    # Generation-aware VMEM budget: limit follows what we actually allocate.
    try:
        cap = pltpu.get_tpu_info().vmem_capacity_bytes
    except Exception:
        cap = 64 * 1024 * 1024
    tile_bytes = R * thw * itemsize
    fixed_bytes = (R * hidden + hidden + hidden * K + K) * 4 * 2  # dbl-buffered
    acc_bytes = R * 128 * 4
    needed = 2 * tile_bytes + fixed_bytes + acc_bytes + (2 << 20)
    vmem_limit = int(min(cap * 3 // 4, max(needed, 32 << 20)))

    cost = pl.CostEstimate(
        flops=(B * C * HW                 # spatial sum: ~1 add / element
               + 2 * B * C * hidden       # first linear
               + 2 * B * hidden * K       # second linear
               + 6 * B * K),              # softmax arithmetic
        transcendentals=B * K,
        bytes_accessed=(x2.size * itemsize
                        + (R * hidden + hidden + hidden * K + K) * 4
                        + B * K * 4),
    )

    out3 = pl.pallas_call(
        _make_attention_kernel(tb, C),
        out_shape=jax.ShapeDtypeStruct((B // tb, tb, K), jnp.float32),
        grid_spec=pltpu.PrefetchScalarGridSpec(
            num_scalar_prefetch=1,        # scales -> SMEM, first kernel arg
            grid=grid,
            in_specs=[
                # x: (rows, HW) streamed as (R, thw) blocks; double-buffered DMA.
                pl.BlockSpec((R, thw), lambda b, h, s: (b, h)),
                # Weights / biases: whole-array blocks, resident across the grid.
                pl.BlockSpec((R, hidden), lambda b, h, s: (0, 0)),
                pl.BlockSpec((1, hidden), lambda b, h, s: (0, 0)),
                pl.BlockSpec((hidden, K), lambda b, h, s: (0, 0)),
                pl.BlockSpec((1, K), lambda b, h, s: (0, 0)),
            ],
            # Output block constant along the HW (reduction) axis -> accumulator
            # pattern; written in the finalize step only.
            out_specs=pl.BlockSpec((1, tb, K), lambda b, h, s: (b, 0, 0)),
            scratch_shapes=[pltpu.VMEM((R, 1), jnp.float32)],
        ),
        compiler_params=pltpu.CompilerParams(
            dimension_semantics=("parallel", "arbitrary"),
            vmem_limit_bytes=vmem_limit,
        ),
        cost_estimate=cost,
    )(scales, x2, w1_rows, b1_row, w2, b2_row)

    return out3.reshape(B, K)


def reference(x, w1, b1, w2, b2, temperature=1.0):
    pooled = jnp.mean(x, axis=(2, 3))
    h = jnp.maximum(pooled @ w1 + b1, 0.0)
    scores = (h @ w2 + b2) / temperature
    return jax.nn.softmax(scores, axis=-1)


if __name__ == "__main__":
    # Small shapes consistent with the module: B=2, c_dim=4, H=W=16,
    # hidden_dim=32, nof_kernels=8.
    B, C, H, W = 2, 4, 16, 16
    hidden_dim, nof_kernels = 32, 8
    temperature = 2.0

    key = jax.random.PRNGKey(0)
    kx, k1, k2, k3, k4 = jax.random.split(key, 5)

    x = jax.random.normal(kx, (B, C, H, W), dtype=jnp.float32)
    w1 = jax.random.normal(k1, (C, hidden_dim), jnp.float32) / jnp.sqrt(C)
    b1 = jax.random.normal(k2, (hidden_dim,), jnp.float32) * 0.01
    w2 = jax.random.normal(k3, (hidden_dim, nof_kernels),
                           jnp.float32) / jnp.sqrt(hidden_dim)
    b2 = jax.random.normal(k4, (nof_kernels,), jnp.float32) * 0.01

    # block_hw=128 forces a 2-step spatial reduction so the accumulator
    # init / accumulate / finalize path is exercised at these small shapes.
    out = attention_layer(x, w1, b1, w2, b2, temperature=temperature,
                          block_hw=128)
    out = jax.block_until_ready(out)

    ref = reference(x, w1, b1, w2, b2, temperature=temperature)
    assert out.shape == (B, nof_kernels)
    max_err = float(jnp.max(jnp.abs(out - ref)))
    assert jnp.allclose(out, ref, atol=1e-5, rtol=1e-5), max_err
    assert jnp.allclose(jnp.sum(out, axis=-1), 1.0, atol=1e-5)
    print("KERNEL_OK")
</pallas_src>

<mosaic_0001>
module attributes {stable_mosaic.version = 11 : i64} {
  func.func @kernel(%arg0: i32, %arg1: i32, %arg2: memref<2xf32, #tpu.memory_space<smem>>, %arg3: memref<8x128xf32, #tpu.memory_space<vmem>>, %arg4: memref<8x32xf32, #tpu.memory_space<vmem>>, %arg5: memref<1x32xf32, #tpu.memory_space<vmem>>, %arg6: memref<32x8xf32, #tpu.memory_space<vmem>>, %arg7: memref<1x8xf32, #tpu.memory_space<vmem>>, %arg8: memref<1x2x8xf32, #tpu.memory_space<vmem>>, %arg9: memref<8x1xf32, #tpu.memory_space<vmem>>) attributes {dimension_semantics = [#tpu.dimension_semantics<parallel>, #tpu.dimension_semantics<arbitrary>], iteration_bounds = array<i64: 1, 2>, scalar_prefetch = 1 : i64, scratch_operands = 1 : i64, tpu.core_type = #tpu.core_type<tc>, window_params = [{transform_indices = @transform_0, window_bounds = array<i64: 8, 128>}, {pipeline_mode = #tpu.pipeline_mode<synchronous>, transform_indices = @transform_1, window_bounds = array<i64: 8, 32>}, {pipeline_mode = #tpu.pipeline_mode<synchronous>, transform_indices = @transform_2, window_bounds = array<i64: 1, 32>}, {pipeline_mode = #tpu.pipeline_mode<synchronous>, transform_indices = @transform_3, window_bounds = array<i64: 32, 8>}, {pipeline_mode = #tpu.pipeline_mode<synchronous>, transform_indices = @transform_4, window_bounds = array<i64: 1, 8>}, {transform_indices = @transform_5, window_bounds = array<i64: 1, 2, 8>}]} {
    %c0_i32 = arith.constant 0 : i32
    %0 = arith.cmpi eq, %arg1, %c0_i32 : i32
    %1 = arith.extui %0 : i1 to i32
    %c0_i32_0 = arith.constant 0 : i32
    %2 = arith.cmpi ne, %1, %c0_i32_0 : i32
    scf.if %2 {
      %cst_7 = arith.constant 0.000000e+00 : f32
      %12 = vector.broadcast %cst_7 : f32 to vector<8x1xf32>
      %c0_8 = arith.constant 0 : index
      %c0_9 = arith.constant 0 : index
      %13 = vector.load %arg9[%c0_8, %c0_9] : memref<8x1xf32, #tpu.memory_space<vmem>>, vector<8x1xf32>
      tpu.vector_store %arg9[%c0_8, %c0_9], %12 {strides = array<i32>} : memref<8x1xf32, #tpu.memory_space<vmem>>, vector<8x1xf32>,
    } else {
    }
    %c0 = arith.constant 0 : index
    %c0_1 = arith.constant 0 : index
    %3 = vector.load %arg9[%c0, %c0_1] : memref<8x1xf32, #tpu.memory_space<vmem>>, vector<8x1xf32>
    %c0_2 = arith.constant 0 : index
    %c0_3 = arith.constant 0 : index
    %4 = vector.load %arg3[%c0_2, %c0_3] : memref<8x128xf32, #tpu.memory_space<vmem>>, vector<8x128xf32>
    %cst = arith.constant dense<0.000000e+00> : vector<8xf32>
    %5 = vector.multi_reduction <add>, %4, %cst [1] : vector<8x128xf32> to vector<8xf32>
    %6 = vector.shape_cast %5 : vector<8xf32> to vector<8x1xf32>
    %7 = arith.addf %3, %6 : vector<8x1xf32>
    %c0_4 = arith.constant 0 : index
    %c0_5 = arith.constant 0 : index
    %8 = vector.load %arg9[%c0_4, %c0_5] : memref<8x1xf32, #tpu.memory_space<vmem>>, vector<8x1xf32>
    tpu.vector_store %arg9[%c0_4, %c0_5], %7 {strides = array<i32>} : memref<8x1xf32, #tpu.memory_space<vmem>>, vector<8x1xf32>,
    %c1_i32 = arith.constant 1 : i32
    %9 = arith.cmpi eq, %arg1, %c1_i32 : i32
    %10 = arith.extui %9 : i1 to i32
    %c0_i32_6 = arith.constant 0 : i32
    %11 = arith.cmpi ne, %10, %c0_i32_6 : i32
    scf.if %11 {
      %c0_7 = arith.constant 0 : index
      %12 = memref.load %arg2[%c0_7] : memref<2xf32, #tpu.memory_space<smem>>
      %c1 = arith.constant 1 : index
      %13 = memref.load %arg2[%c1] : memref<2xf32, #tpu.memory_space<smem>>
      %c0_8 = arith.constant 0 : index
      %c0_9 = arith.constant 0 : index
      %14 = vector.load %arg9[%c0_8, %c0_9] : memref<8x1xf32, #tpu.memory_space<vmem>>, vector<8x1xf32>
      %15 = vector.broadcast %12 : f32 to vector<8x1xf32>
      %16 = arith.mulf %14, %15 : vector<8x1xf32>
      %c0_10 = arith.constant 0 : index
      %c0_11 = arith.constant 0 : index
      %17 = vector.load %arg4[%c0_10, %c0_11] : memref<8x32xf32, #tpu.memory_space<vmem>>, vector<8x32xf32>
      %18 = vector.broadcast %16 : vector<8x1xf32> to vector<8x32xf32>
      %19 = arith.mulf %18, %17 : vector<8x32xf32>
      %c0_12 = arith.constant 0 : index
      %c0_13 = arith.constant 0 : index
      %20 = vector.load %arg5[%c0_12, %c0_13] : memref<1x32xf32, #tpu.memory_space<vmem>>, vector<1x32xf32>
      %c0_14 = arith.constant 0 : index
      %c0_15 = arith.constant 0 : index
      %21 = vector.load %arg6[%c0_14, %c0_15] : memref<32x8xf32, #tpu.memory_space<vmem>>, vector<32x8xf32>
      %c0_16 = arith.constant 0 : index
      %c0_17 = arith.constant 0 : index
      %22 = vector.load %arg7[%c0_16, %c0_17] : memref<1x8xf32, #tpu.memory_space<vmem>>, vector<1x8xf32>
      %23 = tpu.iota {dimensions = array<i32: 0>} : vector<8x1xi32>
      %c0_i32_18 = arith.constant 0 : i32
      %24 = vector.broadcast %c0_i32_18 : i32 to vector<8x1xi32>
      %25 = arith.cmpi sge, %23, %24 : vector<8x1xi32>
      %c4_i32 = arith.constant 4 : i32
      %26 = vector.broadcast %c4_i32 : i32 to vector<8x1xi32>
      %27 = arith.cmpi slt, %23, %26 : vector<8x1xi32>
      %28 = arith.andi %25, %27 : vector<8x1xi1>
      %cst_19 = arith.constant 0.000000e+00 : f32
      %29 = vector.shape_cast %28 : vector<8x1xi1> to vector<8x1xi1>
      %30 = vector.broadcast %29 : vector<8x1xi1> to vector<8x32xi1>
      %31 = vector.broadcast %cst_19 : f32 to vector<8x32xf32>
      %32 = arith.select %30, %19, %31 : vector<8x32xi1>, vector<8x32xf32>
      %cst_20 = arith.constant dense<0.000000e+00> : vector<32xf32>
      %33 = vector.multi_reduction <add>, %32, %cst_20 [0] : vector<8x32xf32> to vector<32xf32>
      %34 = vector.shape_cast %33 : vector<32xf32> to vector<1x32xf32>
      %35 = arith.addf %34, %20 : vector<1x32xf32>
      %cst_21 = arith.constant 0.000000e+00 : f32
      %36 = vector.broadcast %cst_21 : f32 to vector<1x32xf32>
      %37 = arith.maximumf %35, %36 : vector<1x32xf32>
      %38 = vector.shape_cast %37 : vector<1x32xf32> to vector<1x32x1xf32>
      %39 = vector.shape_cast %21 : vector<32x8xf32> to vector<1x32x8xf32>
      %40 = vector.broadcast %38 : vector<1x32x1xf32> to vector<1x32x8xf32>
      %41 = arith.mulf %40, %39 : vector<1x32x8xf32>
      %cst_22 = arith.constant dense<0.000000e+00> : vector<1x8xf32>
      %42 = vector.multi_reduction <add>, %41, %cst_22 [1] : vector<1x32x8xf32> to vector<1x8xf32>
      %43 = arith.addf %42, %22 : vector<1x8xf32>
      %44 = vector.broadcast %13 : f32 to vector<1x8xf32>
      %45 = arith.mulf %43, %44 : vector<1x8xf32>
      %cst_23 = arith.constant dense<0xFF800000> : vector<1xf32>
      %46 = vector.multi_reduction <maximumf>, %45, %cst_23 [1] : vector<1x8xf32> to vector<1xf32>
      %47 = vector.shape_cast %46 : vector<1xf32> to vector<1x1xf32>
      %48 = vector.broadcast %47 : vector<1x1xf32> to vector<1x8xf32>
      %49 = arith.subf %45, %48 : vector<1x8xf32>
      %50 = math.exp %49 : vector<1x8xf32>
      %cst_24 = arith.constant dense<0.000000e+00> : vector<1xf32>
      %51 = vector.multi_reduction <add>, %50, %cst_24 [1] : vector<1x8xf32> to vector<1xf32>
      %52 = vector.shape_cast %51 : vector<1xf32> to vector<1x1xf32>
      %53 = vector.broadcast %52 : vector<1x1xf32> to vector<1x8xf32>
      %54 = arith.divf %50, %53 : vector<1x8xf32>
      %c4_i32_25 = arith.constant 4 : i32
      %55 = vector.broadcast %c4_i32_25 : i32 to vector<8x1xi32>
      %56 = arith.cmpi sge, %23, %55 : vector<8x1xi32>
      %c8_i32 = arith.constant 8 : i32
      %57 = vector.broadcast %c8_i32 : i32 to vector<8x1xi32>
      %58 = arith.cmpi slt, %23, %57 : vector<8x1xi32>
      %59 = arith.andi %56, %58 : vector<8x1xi1>
      %cst_26 = arith.constant 0.000000e+00 : f32
      %60 = vector.shape_cast %59 : vector<8x1xi1> to vector<8x1xi1>
      %61 = vector.broadcast %60 : vector<8x1xi1> to vector<8x32xi1>
      %62 = vector.broadcast %cst_26 : f32 to vector<8x32xf32>
      %63 = arith.select %61, %19, %62 : vector<8x32xi1>, vector<8x32xf32>
      %cst_27 = arith.constant dense<0.000000e+00> : vector<32xf32>
      %64 = vector.multi_reduction <add>, %63, %cst_27 [0] : vector<8x32xf32> to vector<32xf32>
      %65 = vector.shape_cast %64 : vector<32xf32> to vector<1x32xf32>
      %66 = arith.addf %65, %20 : vector<1x32xf32>
      %cst_28 = arith.constant 0.000000e+00 : f32
      %67 = vector.broadcast %cst_28 : f32 to vector<1x32xf32>
      %68 = arith.maximumf %66, %67 : vector<1x32xf32>
      %69 = vector.shape_cast %68 : vector<1x32xf32> to vector<1x32x1xf32>
      %70 = vector.shape_cast %21 : vector<32x8xf32> to vector<1x32x8xf32>
      %71 = vector.broadcast %69 : vector<1x32x1xf32> to vector<1x32x8xf32>
      %72 = arith.mulf %71, %70 : vector<1x32x8xf32>
      %cst_29 = arith.constant dense<0.000000e+00> : vector<1x8xf32>
      %73 = vector.multi_reduction <add>, %72, %cst_29 [1] : vector<1x32x8xf32> to vector<1x8xf32>
      %74 = arith.addf %73, %22 : vector<1x8xf32>
      %75 = vector.broadcast %13 : f32 to vector<1x8xf32>
      %76 = arith.mulf %74, %75 : vector<1x8xf32>
      %cst_30 = arith.constant dense<0xFF800000> : vector<1xf32>
      %77 = vector.multi_reduction <maximumf>, %76, %cst_30 [1] : vector<1x8xf32> to vector<1xf32>
      %78 = vector.shape_cast %77 : vector<1xf32> to vector<1x1xf32>
      %79 = vector.broadcast %78 : vector<1x1xf32> to vector<1x8xf32>
      %80 = arith.subf %76, %79 : vector<1x8xf32>
      %81 = math.exp %80 : vector<1x8xf32>
      %cst_31 = arith.constant dense<0.000000e+00> : vector<1xf32>
      %82 = vector.multi_reduction <add>, %81, %cst_31 [1] : vector<1x8xf32> to vector<1xf32>
      %83 = vector.shape_cast %82 : vector<1xf32> to vector<1x1xf32>
      %84 = vector.broadcast %83 : vector<1x1xf32> to vector<1x8xf32>
      %85 = arith.divf %81, %84 : vector<1x8xf32>
      %86 = tpu.concatenate %54, %85 in 0 : vector<1x8xf32>, vector<1x8xf32> -> vector<2x8xf32>
      %87 = vector.shape_cast %86 : vector<2x8xf32> to vector<1x2x8xf32>
      %c0_32 = arith.constant 0 : index
      %c0_33 = arith.constant 0 : index
      %c0_34 = arith.constant 0 : index
      %88 = vector.load %arg8[%c0_32, %c0_33, %c0_34] : memref<1x2x8xf32, #tpu.memory_space<vmem>>, vector<1x2x8xf32>
      tpu.vector_store %arg8[%c0_32, %c0_33, %c0_34], %87 {strides = array<i32>} : memref<1x2x8xf32, #tpu.memory_space<vmem>>, vector<1x2x8xf32>,
    } else {
    }
    return
  }
  func.func @transform_0(%arg0: i32, %arg1: i32, %arg2: memref<2xf32, #tpu.memory_space<smem>>) -> (i32, i32) {
    %c0_i32 = arith.constant 0 : i32
    return %arg0, %arg1 : i32, i32
  }
  func.func @transform_1(%arg0: i32, %arg1: i32, %arg2: memref<2xf32, #tpu.memory_space<smem>>) -> (i32, i32) {
    %c0_i32 = arith.constant 0 : i32
    %c0_i32_0 = arith.constant 0 : i32
    %c0_i32_1 = arith.constant 0 : i32
    return %c0_i32, %c0_i32_0 : i32, i32
  }
  func.func @transform_2(%arg0: i32, %arg1: i32, %arg2: memref<2xf32, #tpu.memory_space<smem>>) -> (i32, i32) {
    %c0_i32 = arith.constant 0 : i32
    %c0_i32_0 = arith.constant 0 : i32
    %c0_i32_1 = arith.constant 0 : i32
    return %c0_i32, %c0_i32_0 : i32, i32
  }
  func.func @transform_3(%arg0: i32, %arg1: i32, %arg2: memref<2xf32, #tpu.memory_space<smem>>) -> (i32, i32) {
    %c0_i32 = arith.constant 0 : i32
    %c0_i32_0 = arith.constant 0 : i32
    %c0_i32_1 = arith.constant 0 : i32
    return %c0_i32, %c0_i32_0 : i32, i32
  }
  func.func @transform_4(%arg0: i32, %arg1: i32, %arg2: memref<2xf32, #tpu.memory_space<smem>>) -> (i32, i32) {
    %c0_i32 = arith.constant 0 : i32
    %c0_i32_0 = arith.constant 0 : i32
    %c0_i32_1 = arith.constant 0 : i32
    return %c0_i32, %c0_i32_0 : i32, i32
  }
  func.func @transform_5(%arg0: i32, %arg1: i32, %arg2: memref<2xf32, #tpu.memory_space<smem>>) -> (i32, i32, i32) {
    %c0_i32 = arith.constant 0 : i32
    %c0_i32_0 = arith.constant 0 : i32
    %c0_i32_1 = arith.constant 0 : i32
    return %arg0, %c0_i32, %c0_i32_0 : i32, i32, i32
  }
}

</mosaic_0001>

<bundles_post_ra>
// kernel: tpu_custom_call.1
= control target key start
LH: loop header
LB: loop body
LE: loop exit
PB: predicated region body
PF: predicated region fallthrough
CT: control target
= control target key end

     0   :  { %s731_s0 = inlined_call_operand.vmem [shape: f32[2], index: 0, kind: input, shape index: {}]   ;;  %s732_s1 = inlined_call_operand.vmem [shape: f32[8,256], index: 1, kind: input, shape index: {}]   ;;  %s733_s2 = inlined_call_operand.vmem [shape: f32[8,32], index: 2, kind: input, shape index: {}]   ;;  %s734_s3 = inlined_call_operand.vmem [shape: f32[1,32], index: 3, kind: input, shape index: {}]   ;;  %s735_s4 = inlined_call_operand.vmem [shape: f32[32,8], index: 4, kind: input, shape index: {}]   ;;  %s736_s5 = inlined_call_operand.vmem [shape: f32[1,8], index: 5, kind: input, shape index: {}]   ;;  %s737_s6 = inlined_call_operand.hbm [shape: f32[1,2,8], index: 6, kind: output, shape index: {}]  }
   0x1   :  { %s11_s23 = sshll.u32 %s731_s0, 4  ;;  %s12_s23 = int_to_ptr.vmem [resolvable:$true] %s11_s23 }
   0x2   :  { %s542_s24 = scalar_lea.vmem %s12_s23, 16  ;;  %p547_p1 = scmp.lt.s32.totalorder %s12_s23, %s12_s23 }
   0x3   :  { %p543_p0 = scmp.ne.s32.totalorder %s12_s23, %s542_s24  ;;  %p548_p2 = scmp.lt.s32.totalorder %s542_s24, %s542_s24 }
   0x5   :  { %p549_p3 = por %p548_p2, %p547_p1 }
   0x7   :  { %p550_p4 = pnand %p549_p3, %p543_p0 }
   0x9   :  { %553 = shalt.err (!%p550_p4)  }
   0xa   :  { %s608_s25 = smov [#allocation4]  }
   0xb   :  { %14 = dma.vmem_to_smem %s12_s23, 16, %s608_s25, [#allocation3] }
   0xc   :  { %590 = dma.done.wait [#allocation3], 16 }
   0xd   :  { %591 = vsyncadd [#allocation3], 4294967280 }
   0xe   :  { %16 = sfence }
   0xf   :  { %17 = vsyncpa [#allocation6], 0  ;;  %s650_s26 = smov 0   ;;  %s652_s27 = smov 0  }
  0x10   :  { %s654_s28 = smov 0  }
  0x11 LB: > { %s487_s0 = sadd.s32 4294967295, %s606_s28   ;;  %s32_s29 = sadd.s32 1, %s602_s27  ;;  %s606_s28 = sphi %s654_s28, %s23_s28   ;;  %s602_s27 = sphi %s652_s27, %s740_s27   ;;  %s598_s26 = sphi %s650_s26, %s739_s26  }
  0x12   : > { %p33_p5 = scmp.ge.s32.totalorder %s32_s29, 2  ;;  %p490_p6 = scmp.ge.s32.totalorder %s606_s28, 1 }
  0x13   : > { %p212_p7 = scmp.lt.s32.totalorder %s606_s28, 3 }
  0x14   : > { %s742_s29 = smov (%p33_p5, %s32_s29), 0 }
  0x15   : > { %p213_p8 = pnand %p490_p6, %p212_p7 }
  0x16   : > { %p240_p9 = scmp.lt.s32.totalorder (!%p213_p8), %s598_s26, 1  ;;  %p492_p10 = scmp.ne.s32.totalorder (!%p213_p8), %s598_s26, 0 }
  0x17   : > { %216 = sbr.rel (%p213_p8) target bundleno = 813 (0x32d), region = 40 }
  0x1c   : > { %s241_s30 = scalar_select %p240_p9, %s598_s26, 1 }
  0x1d   : > { %249 = sbr.rel (%p492_p10) target bundleno = 36 (0x24), region = 44 }
  0x1e   : > { %s491_s7 = sshll.u32 %s241_s30, 3 }
  0x1f   : > { %s245_s10 = scalar_lea.vmem %s732_s1, %s491_s7 }
  0x22   : > { %vm250_vm0 = vcmask 7168   ;;  %v609_v0 = vmov 0.0  }
  0x23   : > { %251 = vst.msk [vmem:[#allocation2] sm:$0xff] %vm250_vm0, %v609_v0 }
  0x24 PF: > { %v253_v1 = vld [vmem:[%s245_s10] sm:$0xff]  ;;  %vm257_vm1 = vcmask 7168   ;;  %p493_p11 = scmp.ne.s32.totalorder %s598_s26, 1 }
  0x25   : > { %254 = vadd.xlane.f32.xlu0 %v253_v1  ;;  %s263_s11 = sld [smem:[#allocation4]] (!%p493_p11) }
  0x26   : > { %s494_s24 = sld [smem:[#allocation4 + $0x1]] (!%p493_p11) }
  0x2a   : > { %v252_v2 = vld [vmem:[#allocation2] sm:$0xff] }
  0xad   : > { %262 = sbr.rel (%p493_p11) target bundleno = 798 (0x31e), region = 48 }
  0xae   : > { %v255_v3 = vpop.xlane.xlu0 %254 }
  0xaf   : > { %v256_v4 = vadd.f32 %v255_v3, %v252_v2 }
  0xb1   : > { %258 = vst.msk [vmem:[#allocation2] sm:$0xff] %vm257_vm1, %v256_v4 }
  0xb2   : > { %v610_v5 = vmov 0   ;;  %v266_v7 = vstv %s263_s11  ;;  %v281_v9 = vlaneseq  ;;  %v268_v11 = vld [vmem:[%s733_s2] sm:$0xff]  ;;  %vm289_vm4 = vcmask 261120   ;;  %v277_v40 = vld [vmem:[%s735_s4 + $0x8] sm:$0xff]  ;;  %v278_v48 = vld [vmem:[%s735_s4 + $0x10] sm:$0xff] }
  0xb3   : > { %533 = vset.pattern.permute.xlu0 %v610_v5  ;;  %v275_v28 = vld [vmem:[%s734_s3] sm:$0x1]  ;;  %vm322_vm5 = vcmask 64512   ;;  %v279_v57 = vld [vmem:[%s735_s4 + $0x18] sm:$0xff]  ;;  %vm339_vm6 = vcmask 57344   ;;  %vm418_vm7 = vcmask 1040384  }
  0xb4   : > { %v282_v10 = vshrl.u32 %v281_v9, 7  ;;  %v276_v41 = vld [vmem:[%s735_s4] sm:$0xff]  ;;  %vm420_vm8 = vcmask 58368  }
  0xb6   : > { %vm284_vm2 = vcmp.lt.s32.totalorder %v282_v10, 4  ;;  %vm351_vm3 = vcmp.ge.s32.totalorder %v282_v10, 4  ;;  %v301_v31 = vsub.s32 0, %v282_v10 }
  0xb8   : > { %v265_v6 = vld [vmem:[#allocation2] sm:$0xff] }
  0xb9   : > { %v267_v8 = vmul.f32 %v266_v7, %v265_v6 }
  0xbb   : > { %271 = vperm.xlu0 %533, %v267_v8  }
 0x136   : > { %v272_v12 = vpop.permute.xlu0 %271 }
 0x137   : > { %v274_v13 = vmul.f32 %v272_v12, %v268_v11 }
 0x139   : > { %v288_v14 = vsel %vm284_vm2, %v274_v13, 0.0  ;;  %v356_v15 = vsel %vm351_vm3, %v274_v13, 0.0 }
 0x13a   : > { %v290_v16 = vsel %vm289_vm4, %v288_v14, 0.0  ;;  %v357_v17 = vsel %vm289_vm4, %v356_v15, 0.0 }
 0x13b   : > { %v291_v18 = vrot.slane %v290_v16, 4  ;;  %v358_v19 = vrot.slane %v357_v17, 4 }
 0x13d   : > { %v292_v20 = vadd.f32 %v291_v18, %v290_v16  ;;  %v359_v21 = vadd.f32 %v358_v19, %v357_v17  ;;  %v280_v18 = vld [vmem:[%s736_s5] sm:$0x1] }
 0x13f   : > { %v293_v22 = vrot.slane %v292_v20, 2  ;;  %v360_v23 = vrot.slane %v359_v21, 2 }
 0x141   : > { %v294_v24 = vadd.f32 %v293_v22, %v292_v20  ;;  %v361_v25 = vadd.f32 %v360_v23, %v359_v21  ;;  %v337_v21 = vstv %s494_s24 }
 0x143   : > { %v295_v26 = vrot.slane %v294_v24, 1  ;;  %v362_v27 = vrot.slane %v361_v25, 1 }
 0x145   : > { %v296_v29 = vadd.f32 %v295_v26, %v294_v24  ;;  %v363_v30 = vadd.f32 %v362_v27, %v361_v25 }
 0x147   : > { %v364_v32 = vadd.f32 %v363_v30, %v275_v28  ;;  %v297_v33 = vadd.f32 %v296_v29, %v275_v28 }
 0x149   : > { %v365_v34 = vmax.f32 %v364_v32, 0.0  ;;  %v298_v36 = vmax.f32 %v297_v33, 0.0 }
 0x14b   : > { %v369_v35 = vrot.slane %v365_v34, %v301_v31  ;;  %v302_v37 = vrot.slane %v298_v36, %v301_v31 }
 0x14d   : > { %375 = vbcast.lane.b32.xlu1 %v369_v35, 264  ;;  %371 = vbcast.lane.b32.xlu0 %v369_v35, 256 }
 0x151   : > { %308 = vbcast.lane.b32.xlu0 %v302_v37, 264  ;;  %304 = vbcast.lane.b32.xlu1 %v302_v37, 256 }
 0x155   : > { %312 = vbcast.lane.b32.xlu0 %v302_v37, 272  ;;  %379 = vbcast.lane.b32.xlu1 %v369_v35, 272 }
 0x159   : > { %316 = vbcast.lane.b32.xlu0 %v302_v37, 280  ;;  %383 = vbcast.lane.b32.xlu1 %v369_v35, 280 }
 0x1bf   : > { %v376_v38 = vpop.permute.xlu1 %375  ;;  %v372_v39 = vpop.permute.xlu0 %371 }
 0x1c0   : > { %v386_v42 = vmul.f32 %v376_v38, %v277_v40  ;;  %v385_v43 = vmul.f32 %v372_v39, %v276_v41 }
 0x1c2   : > { %v390_v49 = vsel %vm322_vm5, %v386_v42, 0.0  ;;  %v389_v50 = vsel %vm322_vm5, %v385_v43, 0.0 }
 0x1c3   : > { %v309_v44 = vpop.permute.xlu0 %308  ;;  %v305_v45 = vpop.permute.xlu1 %304  ;;  %v391_v60 = vadd.f32 %v390_v49, %v389_v50 }
 0x1c4   : > { %v319_v46 = vmul.f32 %v309_v44, %v277_v40  ;;  %v318_v47 = vmul.f32 %v305_v45, %v276_v41 }
 0x1c6   : > { %v324_v53 = vsel %vm322_vm5, %v319_v46, 0.0  ;;  %v323_v54 = vsel %vm322_vm5, %v318_v47, 0.0 }
 0x1c7   : > { %v313_v51 = vpop.permute.xlu0 %312  ;;  %v380_v52 = vpop.permute.xlu1 %379  ;;  %v325_v61 = vadd.f32 %v324_v53, %v323_v54 }
 0x1c8   : > { %v320_v55 = vmul.f32 %v313_v51, %v278_v48  ;;  %v387_v56 = vmul.f32 %v380_v52, %v278_v48 }
 0x1ca   : > { %v326_v58 = vsel %vm322_vm5, %v320_v55, 0.0  ;;  %v392_v59 = vsel %vm322_vm5, %v387_v56, 0.0 }
 0x1cb   : > { %v317_v62 = vpop.permute.xlu0 %316  ;;  %v384_v63 = vpop.permute.xlu1 %383  ;;  %v327_v2 = vadd.f32 %v326_v58, %v325_v61  ;;  %v393_v3 = vadd.f32 %v392_v59, %v391_v60 }
 0x1cc   : > { %v321_v0 = vmul.f32 %v317_v62, %v279_v57  ;;  %v388_v1 = vmul.f32 %v384_v63, %v279_v57 }
 0x1ce   : > { %v328_v4 = vsel %vm322_vm5, %v321_v0, 0.0  ;;  %v394_v5 = vsel %vm322_vm5, %v388_v1, 0.0 }
 0x1cf   : > { %v329_v6 = vadd.f32 %v328_v4, %v327_v2  ;;  %v395_v7 = vadd.f32 %v394_v5, %v393_v3 }
 0x1d1   : > { %v330_v8 = vrot.slane %v329_v6, 4  ;;  %v396_v9 = vrot.slane %v395_v7, 4 }
 0x1d3   : > { %v331_v10 = vadd.f32 %v330_v8, %v329_v6  ;;  %v397_v11 = vadd.f32 %v396_v9, %v395_v7 }
 0x1d5   : > { %v332_v12 = vrot.slane %v331_v10, 2  ;;  %v398_v13 = vrot.slane %v397_v11, 2 }
 0x1d7   : > { %v333_v14 = vadd.f32 %v332_v12, %v331_v10  ;;  %v399_v15 = vadd.f32 %v398_v13, %v397_v11 }
 0x1d9   : > { %v334_v16 = vrot.slane %v333_v14, 1  ;;  %v400_v17 = vrot.slane %v399_v15, 1 }
 0x1db   : > { %v335_v19 = vadd.f32 %v334_v16, %v333_v14  ;;  %v401_v20 = vadd.f32 %v400_v17, %v399_v15 }
 0x1dd   : > { %v336_v22 = vadd.f32 %v335_v19, %v280_v18  ;;  %v402_v23 = vadd.f32 %v401_v20, %v280_v18 }
 0x1df   : > { %v338_v24 = vmul.f32 %v337_v21, %v336_v22  ;;  %v403_v25 = vmul.f32 %v402_v23, %v337_v21 }
 0x1e1   : > { %v340_v26 = vsel %vm339_vm6, %v338_v24, -inf  ;;  %v404_v27 = vsel %vm339_vm6, %v403_v25, -inf }
 0x1e2   : > { %341 = vmax.xlane.f32.xlu0 %v340_v26  ;;  %405 = vmax.xlane.f32.xlu1 %v404_v27 }
 0x26b   : > { %v342_v28 = vpop.xlane.xlu0 %341  ;;  %v406_v29 = vpop.xlane.xlu1 %405 }
 0x26c   : > { %v343_v30 = vsub.f32 %v338_v24, %v342_v28  ;;  %v407_v31 = vsub.f32 %v403_v25, %v406_v29 }
 0x26e   : > { %v344_v32 = vmul.f32 1.442695, %v343_v30  ;;  %v408_v33 = vmul.f32 1.442695, %v407_v31 }
 0x270   : > { %534 = vpow2.f32 %v344_v32 }
 0x271   : > { %536 = vpow2.f32 %v408_v33 }
 0x27d   : > { %v535_v34 = vpop.eup %534 }
 0x27e   : > { %v537_v35 = vpop.eup %536  ;;  %v346_v36 = vsel %vm339_vm6, %v535_v34, 0.0 }
 0x27f   : > { %347 = vadd.xlane.f32.xlu1 %v346_v36  ;;  %v410_v37 = vsel %vm339_vm6, %v537_v35, 0.0 }
 0x280   : > { %411 = vadd.xlane.f32.xlu0 %v410_v37 }
 0x308   : > { %v348_v38 = vpop.xlane.xlu1 %347 }
 0x309   : > { %v412_v39 = vpop.xlane.xlu0 %411  ;;  %538 = vrcp.f32 %v348_v38 }
 0x30a   : > { %540 = vrcp.f32 %v412_v39 }
 0x316   : > { %v539_v40 = vpop.eup %538 }
 0x317   : > { %v541_v41 = vpop.eup %540  ;;  %v350_v44 = vmul.f32 %v539_v40, %v535_v34 }
 0x318   : > { %v414_v42 = vmul.f32 %v541_v41, %v537_v35 }
 0x31a   : > { %v416_v43 = vrot.slane %v414_v42, 7 }
 0x31c   : > { %v419_v45 = vsel %vm418_vm7, %v350_v44, %v416_v43 }
 0x31d   : > { %421 = vst.msk [vmem:[#allocation5] sm:$0x3] %vm420_vm8, %v419_v45 }
 0x31e PF: > { %p707_p12 = scmp.eq.s32.totalorder %s487_s0, 1  ;;  %s611_s7 = smov [#allocation5]  }
 0x31f   : > { %s431_s8 = sshll.u32 %s611_s7, 4  ;;  %s432_s8 = int_to_ptr.vmem [resolvable:$true] %s431_s8 }
 0x320   : > { %s554_s9 = scalar_lea.vmem %s432_s8, 32  ;;  %p561_p2 = scmp.lt.s32.totalorder %s432_s8, %s432_s8 }
 0x321   : > { %p555_p13 = scmp.ne.s32.totalorder %s432_s8, %s554_s9  ;;  %p562_p3 = scmp.lt.s32.totalorder %s554_s9, %s554_s9 }
 0x323   : > { %p556_p0 = pnand %p555_p13, %p707_p12  ;;  %p563_p4 = por %p562_p3, %p561_p2 }
 0x325   : > { %p557_p1 = pneg %p556_p0 }
 0x327   : > { %p564_p5 = pnand %p563_p4, %p557_p1 }
 0x329   : > { %567 = shalt.err (!%p564_p5)
}
 0x32a   : > { %500 = dma.vmem_to_hbm [thread:$0]  (%p707_p12), %s432_s8, 32, %s737_s6, [#allocation6]  }
 0x32b   : > { %593 = dma.done.wait (%p707_p12), [#allocation6], 32  }
 0x32c   : > { %595 = vsyncadd (%p707_p12), [#allocation6], 4294967264 }
 0x32d PF: > { %s23_s28 = sadd.s32 1, %s606_s28   ;;  %s739_s26 = smov %s602_s27 }
 0x32e   : > { %p20_p6 = scmp.ge.s32.totalorder %s23_s28, 4   ;;  %s740_s27 = smov %s742_s29 }
 0x330   :  { %22 = sbr.rel (!%p20_p6) target bundleno = 17 (0x11), region = 76 }
 0x335   :  { %444 = vsyncpa [#allocation6], 1 }
 0x336   :  { %446 = vsyncpa [#allocation6 + $0x1], 1 }

</bundles_post_ra>
